<compile_context>
chip_gen: v7x
topology: tpu7x:2x2x1
jax: 0.10.0
libtpu: 0.0.40
codegen_flags: <defaults>
</compile_context>

<pallas_src>
import jax
import jax.numpy as jnp
from jax.experimental import pallas as pl
from jax.experimental.pallas import tpu as pltpu


_LANE_TILE = 1024   # last-dim width: 8 * 128 lanes -> unmasked, lane-dense stores
_ROW_TILE = 512     # rows per block: 512 x 1024 f32 tile = 2 MiB


def _copy_kernel(x_ref, o_ref):
    # Pure pass-through: copy the current VMEM tile to the (aliased) output tile.
    o_ref[...] = x_ref[...]


def identity(x: jax.Array) -> jax.Array:
    """Pallas identity: returns an array equal to x (same shape/dtype).

    Note: the truly optimal nn.Identity is `return x` (zero HBM traffic); this
    wrapper keeps an explicit Pallas kernel but makes the copy roofline-shaped.
    """
    orig_shape = x.shape
    total = int(x.size)
    if total == 0:
        return x

    flat = x.reshape(-1)

    # Rows of the lane-dense slab (last dim = _LANE_TILE lanes).
    rows_needed = -(-total // _LANE_TILE)
    if rows_needed <= _ROW_TILE:
        # Single block covering the whole (small) slab; full first dim is
        # always a legal block extent even if it is not a multiple of 8.
        rows = rows_needed
        block_rows = rows_needed
    else:
        # Pad rows up to a multiple of the row tile so the block divides evenly.
        rows = -(-rows_needed // _ROW_TILE) * _ROW_TILE
        block_rows = _ROW_TILE

    padded = rows * _LANE_TILE
    if padded != total:
        flat = jnp.pad(flat, (0, padded - total))
    slab = flat.reshape(rows, _LANE_TILE)

    grid = (rows // block_rows,)

    out = pl.pallas_call(
        _copy_kernel,
        out_shape=jax.ShapeDtypeStruct((rows, _LANE_TILE), x.dtype),
        grid=grid,
        in_specs=[pl.BlockSpec((block_rows, _LANE_TILE), lambda i: (i, 0))],
        out_specs=pl.BlockSpec((block_rows, _LANE_TILE), lambda i: (i, 0)),
        # Output aliases the input slab: no second HBM buffer when donatable.
        input_output_aliases={0: 0},
        compiler_params=pltpu.CompilerParams(
            dimension_semantics=("parallel",),
            vmem_limit_bytes=32 * 1024 * 1024,
        ),
    )(slab)

    if padded != total:
        out = out.reshape(-1)[:total]
    return out.reshape(orig_shape)


if __name__ == "__main__":
    key = jax.random.PRNGKey(0)
    x = jax.random.normal(key, (2, 4, 16, 16), dtype=jnp.float32)

    # jit so the reshape + pallas_call fuse and the in/out aliasing can take
    # effect on the intermediate slab buffer.
    y = jax.jit(identity)(x)
    jax.block_until_ready(y)

    assert y.shape == x.shape
    assert y.dtype == x.dtype
    assert bool(jnp.all(y == x))

    print("KERNEL_OK")
</pallas_src>

<mosaic_0001>
module attributes {stable_mosaic.version = 11 : i64} {
  func.func @_copy_kernel(%arg0: i32, %arg1: memref<2x1024xf32, #tpu.memory_space<vmem>>, %arg2: memref<2x1024xf32, #tpu.memory_space<vmem>>) attributes {dimension_semantics = [#tpu.dimension_semantics<parallel>], iteration_bounds = array<i64: 1>, scalar_prefetch = 0 : i64, scratch_operands = 0 : i64, tpu.core_type = #tpu.core_type<tc>, window_params = [{transform_indices = @transform_0, window_bounds = array<i64: 2, 1024>}, {transform_indices = @transform_1, window_bounds = array<i64: 2, 1024>}]} {
    %c0 = arith.constant 0 : index
    %c0_0 = arith.constant 0 : index
    %0 = vector.load %arg1[%c0, %c0_0] : memref<2x1024xf32, #tpu.memory_space<vmem>>, vector<2x1024xf32>
    %c0_1 = arith.constant 0 : index
    %c0_2 = arith.constant 0 : index
    %1 = vector.load %arg2[%c0_1, %c0_2] : memref<2x1024xf32, #tpu.memory_space<vmem>>, vector<2x1024xf32>
    tpu.vector_store %arg2[%c0_1, %c0_2], %0 {strides = array<i32>} : memref<2x1024xf32, #tpu.memory_space<vmem>>, vector<2x1024xf32>,
    return
  }
  func.func @transform_0(%arg0: i32) -> (i32, i32) {
    %c0_i32 = arith.constant 0 : i32
    %c0_i32_0 = arith.constant 0 : i32
    return %arg0, %c0_i32 : i32, i32
  }
  func.func @transform_1(%arg0: i32) -> (i32, i32) {
    %c0_i32 = arith.constant 0 : i32
    %c0_i32_0 = arith.constant 0 : i32
    return %arg0, %c0_i32 : i32, i32
  }
}

</mosaic_0001>

<bundles_post_ra>
// kernel: identity.1
= control target key start
LH: loop header
LB: loop body
LE: loop exit
PB: predicated region body
PF: predicated region fallthrough
CT: control target
= control target key end

     0   :  { %s38_s0 = inlined_call_operand.vmem [shape: f32[2,1024], index: 0, kind: input, shape index: {}, may-alias: {0,1}]   ;;  %s39_s1 = inlined_call_operand.vmem [shape: f32[2,1024], index: 1, kind: output, shape index: {}, may-alias: {0,1}]  }
   0x1   :  { %v8_v0 = vld [vmem:[%s38_s0] sm:$0xff]  ;;  %v9_v1 = vld [vmem:[%s38_s0 + $0x8] sm:$0xff] }
   0x2   :  { %10 = vst [vmem:[%s39_s1] sm:$0xff] %v8_v0  ;;  %11 = vst [vmem:[%s39_s1 + $0x8] sm:$0xff] %v9_v1 }

</bundles_post_ra>
